<compile_context>
chip_gen: v6e
topology: v6e:2x2x1
jax: 0.10.0
libtpu: 0.0.40
codegen_flags: <defaults>
</compile_context>

<pallas_src>
import jax
import jax.numpy as jnp
from jax import lax
from jax.experimental import pallas as pl
from jax.experimental.pallas import tpu as pltpu

EPS = 1e-07
LANES = 128
SUBLANES = 8


def _round_up(x, m):
    return ((x + m - 1) // m) * m


def _make_jsd_kernel(eps, rows_valid, row_tile, sub_tile, blocks_per_part,
                     needs_mask):
    eps = float(eps)
    n_sub = row_tile // sub_tile

    def jsd_kernel(p_ref, q_ref, o_ref):
        c = pl.program_id(0)
        b = pl.program_id(1)

        @pl.when(b == 0)
        def _():
            o_ref[...] = jnp.zeros_like(o_ref)

        # Logical (unclamped) first row of this block — used only by the tail
        # mask so out-of-range / duplicated rows contribute exactly 0.
        base_row = (c * blocks_per_part + b) * row_tile

        def slab(start, acc):
            lp = p_ref[pl.ds(start, sub_tile), :].astype(jnp.float32)
            lq = q_ref[pl.ds(start, sub_tile), :].astype(jnp.float32)

            # sigmoid as a single tanh push (EUP is the binding slot).
            P = 0.5 * (jnp.tanh(0.5 * lp) + 1.0)
            Q = 0.5 * (jnp.tanh(0.5 * lq) + 1.0)
            M = 0.5 * (P + Q)

            # torch.clamp(min=eps, max=1-eps)
            Pc = jnp.clip(P, eps, 1.0 - eps)
            Qc = jnp.clip(Q, eps, 1.0 - eps)
            Mc = jnp.clip(M, eps, 1.0 - eps)
            omPc = 1.0 - Pc
            omQc = 1.0 - Qc
            omMc = 1.0 - Mc

            # Log-subtraction form: 6 logs total, no divisions.
            log_Mc = jnp.log(Mc)
            log_omMc = jnp.log(omMc)
            kl_pm = Pc * (jnp.log(Pc) - log_Mc) + omPc * (jnp.log(omPc) - log_omMc)
            kl_qm = Qc * (jnp.log(Qc) - log_Mc) + omQc * (jnp.log(omQc) - log_omMc)

            # loss = 0.5*mean(kl_pm) + 0.5*mean(kl_qm); same denominator, so
            # accumulate the combined per-element term.
            term = 0.5 * (kl_pm + kl_qm)                  # (sub_tile, 128)

            if needs_mask:
                # Zero rows past the true row count BEFORE the fold so garbage
                # from partial / duplicated blocks never reaches the sum.
                row = (base_row + start
                       + lax.broadcasted_iota(jnp.int32, (sub_tile, LANES), 0))
                term = jnp.where(row < rows_valid, term, 0.0)

            # Fold to one vreg-shaped (8,128) partial via cross-vreg VPU adds
            # (each (8,128) f32 slab is exactly one vreg; the reshape splits
            # the leading dim on a sublane-tile boundary, i.e. layout-free).
            return acc + term.reshape(sub_tile // SUBLANES, SUBLANES, LANES).sum(axis=0)

        zero = jnp.zeros((SUBLANES, LANES), jnp.float32)
        if n_sub == 1:
            acc = slab(0, zero)
        else:
            acc = lax.fori_loop(
                0, n_sub,
                lambda i, a: slab(pl.multiple_of(i * sub_tile, sub_tile), a),
                zero,
                unroll=True)

        # Output block is resident across the 'arbitrary' b axis (index_map is
        # constant in b): accumulate straight into it — no scratch, no copy.
        o_ref[...] += acc

    return jsd_kernel


def jensen_shannon_divergence_loss(logits_P, logits_Q, eps=EPS,
                                    row_tile=8192, sub_tile=1024, num_parts=2):
    """JSD loss over sigmoid(logits), matching the PyTorch module.

    num_parts=2 shards the independent outer grid axis across the two
    TensorCores on v7x; on single-TC v5e/v6e the extra part costs at most one
    masked duplicate block (there is no wrapper padding anymore).
    """
    assert logits_P.shape == logits_Q.shape, "logits_P / logits_Q shape mismatch"
    total = 1
    for d in logits_P.shape:
        total *= int(d)
    assert total > 0

    rows = -(-total // LANES)                       # ceil-div
    lane_pad = rows * LANES - total

    p_flat = logits_P.reshape(-1)
    q_flat = logits_Q.reshape(-1)
    if lane_pad:
        # Tiny (<128 elem) fallback pad, only when total % 128 != 0.
        # Zero logits contribute exactly 0 to the JSD sum.
        p_flat = jnp.pad(p_flat, (0, lane_pad))
        q_flat = jnp.pad(q_flat, (0, lane_pad))
    p2d = p_flat.reshape(rows, LANES)
    q2d = q_flat.reshape(rows, LANES)

    num_parts = max(1, int(num_parts))
    per_part = -(-rows // num_parts)

    # Clamp tiles for small inputs; keep sublane-aligned and row_tile a
    # multiple of the inner sub_tile.
    row_tile = max(SUBLANES, min(int(row_tile), _round_up(per_part, SUBLANES)))
    row_tile = _round_up(row_tile, SUBLANES)
    sub_tile = max(SUBLANES, min(int(sub_tile), row_tile))
    sub_tile = _round_up(sub_tile, SUBLANES)
    row_tile = _round_up(row_tile, sub_tile)

    blocks_total = -(-rows // row_tile)
    blocks_per_part = -(-blocks_total // num_parts)
    grid = (num_parts, blocks_per_part)

    # Mask only when the last block is ragged or some grid step has no block
    # of its own (its index is clamped onto the last real block).
    needs_mask = (rows % row_tile != 0) or (num_parts * blocks_per_part != blocks_total)

    def in_map(c, b):
        blk = c * blocks_per_part + b
        # Clamp so every DMA stays in bounds; duplicated blocks are zeroed by
        # the in-kernel row mask.
        return (jnp.minimum(blk, blocks_total - 1), 0)

    kernel = _make_jsd_kernel(eps, rows, row_tile, sub_tile, blocks_per_part,
                              needs_mask)

    partials = pl.pallas_call(
        kernel,
        out_shape=jax.ShapeDtypeStruct((num_parts, SUBLANES, LANES), jnp.float32),
        grid_spec=pltpu.PrefetchScalarGridSpec(
            num_scalar_prefetch=0,
            grid=grid,
            in_specs=[
                pl.BlockSpec((row_tile, LANES), in_map),
                pl.BlockSpec((row_tile, LANES), in_map),
            ],
            out_specs=pl.BlockSpec((None, SUBLANES, LANES), lambda c, b: (c, 0, 0)),
        ),
        compiler_params=pltpu.CompilerParams(
            dimension_semantics=("parallel", "arbitrary"),
            # ~16 MiB of double-buffered inputs + a few MiB of temporaries at
            # the default tiles; 40 MiB stays under v7x's 64 MiB physical VMEM
            # and lifts v5e's 16 MiB default scoped limit.
            vmem_limit_bytes=40 * 1024 * 1024,
        ),
    )(p2d, q2d)

    # One cheap final cross-lane reduce + divide, outside the hot loop.
    # TODO(synk): for multi-billion-element inputs consider a two-level /
    # Kahan accumulation; single f32 per-lane sums are fine for a loss here.
    return jnp.sum(partials) / jnp.float32(total)


def _reference_loss(logits_P, logits_Q, eps=EPS):
    """Pure-JAX reference mirroring the PyTorch module exactly."""
    def kl(P, Q):
        P = jnp.clip(P, eps, 1.0 - eps)
        Q = jnp.clip(Q, eps, 1.0 - eps)
        return jnp.mean(P * jnp.log(P / Q) + (1 - P) * jnp.log((1 - P) / (1 - Q)))

    P = jax.nn.sigmoid(logits_P)
    Q = jax.nn.sigmoid(logits_Q)
    M = 0.5 * (P + Q)
    return 0.5 * kl(P, M) + 0.5 * kl(Q, M)


if __name__ == "__main__":
    key = jax.random.PRNGKey(0)
    k1, k2 = jax.random.split(key)
    # NCHW logits, small synthetic shapes: batch=2, channels=4, spatial=16x16
    shape = (2, 4, 16, 16)
    logits_P = jax.random.normal(k1, shape, dtype=jnp.float32)
    logits_Q = jax.random.normal(k2, shape, dtype=jnp.float32)

    loss = jensen_shannon_divergence_loss(logits_P, logits_Q)
    loss = jax.block_until_ready(loss)

    ref = _reference_loss(logits_P, logits_Q)
    assert jnp.allclose(loss, ref, rtol=1e-5, atol=1e-6), (loss, ref)

    print("KERNEL_OK")
</pallas_src>

<mosaic_0001>
module attributes {stable_mosaic.version = 11 : i64} {
  func.func @jsd_kernel(%arg0: i32, %arg1: i32, %arg2: memref<8x128xf32, #tpu.memory_space<vmem>>, %arg3: memref<8x128xf32, #tpu.memory_space<vmem>>, %arg4: memref<1x8x128xf32, #tpu.memory_space<vmem>>) attributes {dimension_semantics = [#tpu.dimension_semantics<parallel>, #tpu.dimension_semantics<arbitrary>], iteration_bounds = array<i64: 2, 1>, scalar_prefetch = 0 : i64, scratch_operands = 0 : i64, tpu.core_type = #tpu.core_type<tc>, window_params = [{transform_indices = @transform_0, window_bounds = array<i64: 8, 128>}, {transform_indices = @transform_1, window_bounds = array<i64: 8, 128>}, {transform_indices = @transform_2, window_bounds = array<i64: 1, 8, 128>}]} {
    %c0_i32 = arith.constant 0 : i32
    %0 = arith.cmpi eq, %arg1, %c0_i32 : i32
    %1 = arith.extui %0 : i1 to i32
    %c0_i32_0 = arith.constant 0 : i32
    %2 = arith.cmpi ne, %1, %c0_i32_0 : i32
    scf.if %2 {
      %cst_28 = arith.constant 0.000000e+00 : f32
      %69 = vector.broadcast %cst_28 : f32 to vector<8x128xf32>
      %c0_29 = arith.constant 0 : index
      %c0_30 = arith.constant 0 : index
      %c0_31 = arith.constant 0 : index
      %70 = vector.load %arg4[%c0_29, %c0_30, %c0_31] : memref<1x8x128xf32, #tpu.memory_space<vmem>>, vector<1x8x128xf32>
      %71 = vector.shape_cast %70 : vector<1x8x128xf32> to vector<8x128xf32>
      %72 = vector.shape_cast %69 : vector<8x128xf32> to vector<1x8x128xf32>
      tpu.vector_store %arg4[%c0_29, %c0_30, %c0_31], %72 {strides = array<i32>} : memref<1x8x128xf32, #tpu.memory_space<vmem>>, vector<1x8x128xf32>,
    } else {
    }
    %cst = arith.constant 0.000000e+00 : f32
    %3 = vector.broadcast %cst : f32 to vector<8x128xf32>
    %c0 = arith.constant 0 : index
    %c0_1 = arith.constant 0 : index
    %4 = vector.load %arg2[%c0, %c0_1] : memref<8x128xf32, #tpu.memory_space<vmem>>, vector<8x128xf32>
    %c0_2 = arith.constant 0 : index
    %c0_3 = arith.constant 0 : index
    %5 = vector.load %arg3[%c0_2, %c0_3] : memref<8x128xf32, #tpu.memory_space<vmem>>, vector<8x128xf32>
    %cst_4 = arith.constant 5.000000e-01 : f32
    %6 = vector.broadcast %cst_4 : f32 to vector<8x128xf32>
    %7 = arith.mulf %6, %4 : vector<8x128xf32>
    %8 = math.tanh %7 : vector<8x128xf32>
    %cst_5 = arith.constant 1.000000e+00 : f32
    %9 = vector.broadcast %cst_5 : f32 to vector<8x128xf32>
    %10 = arith.addf %8, %9 : vector<8x128xf32>
    %cst_6 = arith.constant 5.000000e-01 : f32
    %11 = vector.broadcast %cst_6 : f32 to vector<8x128xf32>
    %12 = arith.mulf %11, %10 : vector<8x128xf32>
    %cst_7 = arith.constant 5.000000e-01 : f32
    %13 = vector.broadcast %cst_7 : f32 to vector<8x128xf32>
    %14 = arith.mulf %13, %5 : vector<8x128xf32>
    %15 = math.tanh %14 : vector<8x128xf32>
    %cst_8 = arith.constant 1.000000e+00 : f32
    %16 = vector.broadcast %cst_8 : f32 to vector<8x128xf32>
    %17 = arith.addf %15, %16 : vector<8x128xf32>
    %cst_9 = arith.constant 5.000000e-01 : f32
    %18 = vector.broadcast %cst_9 : f32 to vector<8x128xf32>
    %19 = arith.mulf %18, %17 : vector<8x128xf32>
    %20 = arith.addf %12, %19 : vector<8x128xf32>
    %cst_10 = arith.constant 5.000000e-01 : f32
    %21 = vector.broadcast %cst_10 : f32 to vector<8x128xf32>
    %22 = arith.mulf %21, %20 : vector<8x128xf32>
    %cst_11 = arith.constant 1.000000e-07 : f32
    %cst_12 = arith.constant 0.99999988 : f32
    %23 = vector.broadcast %cst_11 : f32 to vector<8x128xf32>
    %24 = arith.maximumf %23, %12 : vector<8x128xf32>
    %25 = vector.broadcast %cst_12 : f32 to vector<8x128xf32>
    %26 = arith.minimumf %25, %24 : vector<8x128xf32>
    %cst_13 = arith.constant 1.000000e-07 : f32
    %cst_14 = arith.constant 0.99999988 : f32
    %27 = vector.broadcast %cst_13 : f32 to vector<8x128xf32>
    %28 = arith.maximumf %27, %19 : vector<8x128xf32>
    %29 = vector.broadcast %cst_14 : f32 to vector<8x128xf32>
    %30 = arith.minimumf %29, %28 : vector<8x128xf32>
    %cst_15 = arith.constant 1.000000e-07 : f32
    %cst_16 = arith.constant 0.99999988 : f32
    %31 = vector.broadcast %cst_15 : f32 to vector<8x128xf32>
    %32 = arith.maximumf %31, %22 : vector<8x128xf32>
    %33 = vector.broadcast %cst_16 : f32 to vector<8x128xf32>
    %34 = arith.minimumf %33, %32 : vector<8x128xf32>
    %cst_17 = arith.constant 1.000000e+00 : f32
    %35 = vector.broadcast %cst_17 : f32 to vector<8x128xf32>
    %36 = arith.subf %35, %26 : vector<8x128xf32>
    %cst_18 = arith.constant 1.000000e+00 : f32
    %37 = vector.broadcast %cst_18 : f32 to vector<8x128xf32>
    %38 = arith.subf %37, %30 : vector<8x128xf32>
    %cst_19 = arith.constant 1.000000e+00 : f32
    %39 = vector.broadcast %cst_19 : f32 to vector<8x128xf32>
    %40 = arith.subf %39, %34 : vector<8x128xf32>
    %41 = math.log %34 : vector<8x128xf32>
    %42 = math.log %40 : vector<8x128xf32>
    %43 = math.log %26 : vector<8x128xf32>
    %44 = arith.subf %43, %41 : vector<8x128xf32>
    %45 = arith.mulf %26, %44 : vector<8x128xf32>
    %46 = math.log %36 : vector<8x128xf32>
    %47 = arith.subf %46, %42 : vector<8x128xf32>
    %48 = arith.mulf %36, %47 : vector<8x128xf32>
    %49 = arith.addf %45, %48 : vector<8x128xf32>
    %50 = math.log %30 : vector<8x128xf32>
    %51 = arith.subf %50, %41 : vector<8x128xf32>
    %52 = arith.mulf %30, %51 : vector<8x128xf32>
    %53 = math.log %38 : vector<8x128xf32>
    %54 = arith.subf %53, %42 : vector<8x128xf32>
    %55 = arith.mulf %38, %54 : vector<8x128xf32>
    %56 = arith.addf %52, %55 : vector<8x128xf32>
    %57 = arith.addf %49, %56 : vector<8x128xf32>
    %cst_20 = arith.constant 5.000000e-01 : f32
    %58 = vector.broadcast %cst_20 : f32 to vector<8x128xf32>
    %59 = arith.mulf %58, %57 : vector<8x128xf32>
    %60 = vector.shape_cast %59 : vector<8x128xf32> to vector<1x8x128xf32>
    %cst_21 = arith.constant dense<0.000000e+00> : vector<8x128xf32>
    %61 = vector.multi_reduction <add>, %60, %cst_21 [0] : vector<1x8x128xf32> to vector<8x128xf32>
    %62 = arith.addf %3, %61 : vector<8x128xf32>
    %c0_22 = arith.constant 0 : index
    %c0_23 = arith.constant 0 : index
    %c0_24 = arith.constant 0 : index
    %63 = vector.load %arg4[%c0_22, %c0_23, %c0_24] : memref<1x8x128xf32, #tpu.memory_space<vmem>>, vector<1x8x128xf32>
    %64 = vector.shape_cast %63 : vector<1x8x128xf32> to vector<8x128xf32>
    %65 = arith.addf %64, %62 : vector<8x128xf32>
    %c0_25 = arith.constant 0 : index
    %c0_26 = arith.constant 0 : index
    %c0_27 = arith.constant 0 : index
    %66 = vector.load %arg4[%c0_25, %c0_26, %c0_27] : memref<1x8x128xf32, #tpu.memory_space<vmem>>, vector<1x8x128xf32>
    %67 = vector.shape_cast %66 : vector<1x8x128xf32> to vector<8x128xf32>
    %68 = vector.shape_cast %65 : vector<8x128xf32> to vector<1x8x128xf32>
    tpu.vector_store %arg4[%c0_25, %c0_26, %c0_27], %68 {strides = array<i32>} : memref<1x8x128xf32, #tpu.memory_space<vmem>>, vector<1x8x128xf32>,
    return
  }
  func.func @transform_0(%arg0: i32, %arg1: i32) -> (i32, i32) {
    %c1_i32 = arith.constant 1 : i32
    %0 = arith.muli %arg0, %c1_i32 : i32
    %1 = arith.addi %0, %arg1 : i32
    %c1_i32_0 = arith.constant 1 : i32
    %2 = arith.minsi %1, %c1_i32_0 : i32
    %c0_i32 = arith.constant 0 : i32
    %c0_i32_1 = arith.constant 0 : i32
    return %2, %c0_i32 : i32, i32
  }
  func.func @transform_1(%arg0: i32, %arg1: i32) -> (i32, i32) {
    %c1_i32 = arith.constant 1 : i32
    %0 = arith.muli %arg0, %c1_i32 : i32
    %1 = arith.addi %0, %arg1 : i32
    %c1_i32_0 = arith.constant 1 : i32
    %2 = arith.minsi %1, %c1_i32_0 : i32
    %c0_i32 = arith.constant 0 : i32
    %c0_i32_1 = arith.constant 0 : i32
    return %2, %c0_i32 : i32, i32
  }
  func.func @transform_2(%arg0: i32, %arg1: i32) -> (i32, i32, i32) {
    %c0_i32 = arith.constant 0 : i32
    %c0_i32_0 = arith.constant 0 : i32
    %c0_i32_1 = arith.constant 0 : i32
    return %arg0, %c0_i32, %c0_i32_0 : i32, i32, i32
  }
}

</mosaic_0001>

<bundles_post_ra>
// kernel: tpu_custom_call.1
= control target key start
LH: loop header
LB: loop body
LE: loop exit
PB: predicated region body
PF: predicated region fallthrough
CT: control target
= control target key end

     0   :  { %s902_s0 = inlined_call_operand.hbm [shape: f32[16,128], index: 0, kind: input, shape index: {}]   ;;  %s903_s1 = inlined_call_operand.hbm [shape: f32[16,128], index: 1, kind: input, shape index: {}]   ;;  %s904_s2 = inlined_call_operand.hbm [shape: f32[2,8,128], index: 2, kind: output, shape index: {}]  }
   0x1   :  { %905 = sst [smem:[#allocation11_spill]] %s902_s0 }
   0x2   :  { %7 = vsyncpa [#allocation3], 0 }
   0x3   :  { %9 = vsyncpa [#allocation3 + $0x1], 0 }
   0x4   :  { %10 = vsyncpa [#allocation6], 0 }
   0x5   :  { %12 = vsyncpa [#allocation6 + $0x1], 0 }
   0x6   :  { %13 = vsyncpa [#allocation4], 0 }
   0x7   :  { %15 = vsyncpa [#allocation4 + $0x1], 0  ;;  %s710_s9 = smov 0   ;;  %s712_s10 = smov 0  }
   0x8   :  { %s714_s11 = smov 0   ;;  %s716_s12 = smov 0  }
   0x9   :  { %s718_s13 = smov 0   ;;  %s720_s14 = smov 0  }
   0xa   :  { %s722_s15 = smov 0   ;;  %s724_s16 = smov 0  }
   0xb   :  { %s726_s17 = smov 0  }
   0xc LB: > { %s402_s18 = sadd.s32 4294967295, %s690_s17   ;;  %s403_s19 = sadd.s32 4294967294, %s690_s17   ;;  %s690_s17 = sphi %s726_s17, %s21_s17   ;;  %s686_s16 = sphi %s724_s16, %s921_s16   ;;  %s682_s15 = sphi %s722_s15, %s920_s15   ;;  %s678_s14 = sphi %s720_s14, %s919_s14   ;;  %s674_s13 = sphi %s718_s13, %s918_s13   ;;  %s670_s12 = sphi %s716_s12, %s917_s12   ;;  %s666_s11 = sphi %s714_s11, %s916_s11   ;;  %s662_s10 = sphi %s712_s10, %s915_s10   ;;  %s658_s9 = sphi %s710_s9, %s914_s9  }
   0xd   : > { %s33_s20 = sadd.s32 1, %s686_s16  ;;  %p38_p0 = scmp.lt.s32.totalorder %s686_s16, 1 }
   0xe   : > { %p35_p1 = scmp.ge.s32.totalorder %s33_s20, 2  ;;  %s46_s21 = sadd.s32 1, %s678_s14 }
   0xf   : > { %s759_s22 = scalar_select %p38_p0, %s686_s16, 1 }
  0x10   : > { %s923_s20 = smov (%p35_p1, %s33_s20), 0  ;;  %p53_p2 = scmp.ne.s32.totalorder %s678_s14, %s674_s13 }
  0x11   : > { %p54_p3 = scmp.eq.s32.totalorder %s690_s17, 0  ;;  %p41_p4 = scmp.lt.s32.totalorder %s923_s20, 1 }
  0x12   : > { %p59_p5 = scmp.ne.s32.totalorder %s674_s13, %s670_s12  ;;  %p60_p7 = scmp.eq.s32.totalorder %s402_s18, 0 }
  0x13   : > { %p768_p6 = por %p54_p3, %p53_p2  ;;  %s101_s26 = ssub.s32 %s686_s16, %s923_s20 }
  0x14   : > { %s42_s24 = scalar_select %p41_p4, %s923_s20, 1 }
  0x15   : > { %p773_p8 = por %p60_p7, %p59_p5  ;;  %p102_p9 = scmp.eq.s32.totalorder %s101_s26, 0 }
  0x16   : > { %s43_s27 = ssub.s32 %s759_s22, %s42_s24  ;;  %s104_s28 = sadd.s32 1, %s666_s11 }
  0x17   : > { %p44_p10 = scmp.eq.s32.totalorder %s43_s27, 0  ;;  %p114_p11 = scmp.ne.s32.totalorder %s666_s11, %s662_s10 }
  0x18   : > { %s782_s29 = scalar_select %p102_p9, %s666_s11, %s104_s28  }
  0x19   : > { %s785_s30 = scalar_select %p44_p10, %s678_s14, %s46_s21  }
  0x1a   : > { %p115_p12 = scmp.eq.s32.totalorder %s402_s18, 1  ;;  %p120_p13 = scmp.ne.s32.totalorder %s662_s10, %s658_s9 }
  0x1b   : > { %p121_p0 = scmp.eq.s32.totalorder %s403_s19, 1  ;;  %p435_p4 = scmp.lt.s32.totalorder %s690_s17, 2 }
  0x1c   : > { %p791_p1 = por %p115_p12, %p114_p11  ;;  %s802_s5 = sand.u32 1, %s678_s14  }
  0x1d   : > { %p796_p3 = por %p121_p0, %p120_p13  ;;  %s407_s6 = sshll.u32 %s759_s22, 7 }
  0x1e   : > { %s406_s7 = sshll.u32 %s802_s5, 3  ;;  %s910_s0 = sld [smem:[#allocation11_spill]] }
  0x1f   : > { %s145_s19 = scalar_lea.vmem [#allocation2], %s406_s7  ;;  %p811_p5 = pnand %p435_p4, %p768_p6 }
  0x20   : > { %s155_s21 = sshll.u32 %s145_s19, 4  ;;  %p410_p7 = scmp.ge.s32.totalorder %s690_s17, 1  ;;  %s156_s21 = int_to_ptr.vmem [resolvable:$true] %s155_s21 }
  0x21   : > { %p181_p9 = scmp.lt.s32.totalorder %s690_s17, 3  ;;  %s142_s26 = scalar_lea.sflag [#allocation3], %s802_s5 }
  0x22   : > { %p528_p10 = pneg %p811_p5  ;;  %s539_s22 = scalar_lea.vmem %s156_s21, 128 }
  0x23   : > { %p540_p11 = scmp.ne.s32.totalorder %s156_s21, %s539_s22  ;;  %s692_s27 = smov [#allocation2]  }
  0x24   : > { %s153_s18 = scalar_lea.hbm %s910_s0, %s407_s6  ;;  %s544_s23 = sshll.u32 %s692_s27, 4  ;;  %s545_s23 = int_to_ptr.vmem [resolvable:$false] %s544_s23 }
  0x25   : > { %p542_p12 = pnand %p540_p11, %p528_p10  ;;  %s546_s28 = scalar_lea.vmem %s545_s23, 256 }
  0x26   : > { %p547_p6 = scmp.lt.s32.totalorder %s156_s21, %s545_s23  ;;  %p548_p0 = scmp.lt.s32.totalorder %s546_s28, %s539_s22 }
  0x27   : > { %p543_p13 = pneg %p542_p12 }
  0x28   : > { %p549_p4 = por %p548_p0, %p547_p6 }
  0x2a   : > { %p550_p2 = pnand %p549_p4, %p543_p13 }
  0x2c   : > { %553 = shalt.err (!%p550_p2)
}
  0x2d   : > { %427 = dma.hbm_to_vmem [thread:$0]  (!%p811_p5), %s153_s18, 128, %s156_s21, %s142_s26  }
  0x2e   : > { %p829_p11 = pnand %p410_p7, %p181_p9  ;;  %s174_s22 = scalar_lea.hbm %s903_s1, %s407_s6 }
  0x2f   : > { %s166_s27 = scalar_lea.vmem [#allocation5], %s406_s7  ;;  %s163_s28 = scalar_lea.sflag [#allocation6], %s802_s5 }
  0x30   : > { %s176_s23 = sshll.u32 %s166_s27, 4  ;;  %s693_s18 = smov [#allocation5]   ;;  %s177_s23 = int_to_ptr.vmem [resolvable:$true] %s176_s23 }
  0x31   : > { %s567_s0 = scalar_lea.vmem %s177_s23, 128  ;;  %s572_s21 = sshll.u32 %s693_s18, 4  ;;  %s573_s21 = int_to_ptr.vmem [resolvable:$false] %s572_s21 }
  0x32   : > { %p568_p2 = scmp.ne.s32.totalorder %s177_s23, %s567_s0  ;;  %s574_s26 = scalar_lea.vmem %s573_s21, 256 }
  0x33   : > { %p575_p7 = scmp.lt.s32.totalorder %s177_s23, %s573_s21  ;;  %p576_p9 = scmp.lt.s32.totalorder %s574_s26, %s567_s0 }
  0x34   : > { %p570_p12 = pnand %p568_p2, %p528_p10 }
  0x35   : > { %p577_p6 = por %p576_p9, %p575_p7 }
  0x36   : > { %p571_p13 = pneg %p570_p12 }
  0x38   : > { %p578_p0 = pnand %p577_p6, %p571_p13 }
  0x3a   : > { %581 = shalt.err (!%p578_p0)
}
  0x3b   : > { %430 = dma.hbm_to_vmem [thread:$0]  (!%p811_p5), %s174_s22, 128, %s177_s23, %s163_s28  }
  0x3c   : > { %185 = sbr.rel (%p829_p11) target bundleno = 139 (0x8b), region = 28  ;;  %s187_s5 = sand.u32 (!%p829_p11), 1, %s674_s13  }
  0x3d   : > { %s411_s6 = sshll.u32 (!%p829_p11), %s187_s5, 3  ;;  %s188_s7 = scalar_lea.sflag (!%p829_p11), [#allocation3], %s187_s5 }
  0x3e   : > { %s191_s12 = scalar_lea.vmem (!%p829_p11), [#allocation2], %s411_s6 }
  0x41   : > { %645 = dma.done.wait (%p773_p8), %s188_s7, 128  }
  0x42   : > { %647 = vsyncadd (%p773_p8), %s188_s7, 4294967168  ;;  %s197_s0 = scalar_lea.sflag [#allocation6], %s187_s5  ;;  %s200_s19 = scalar_lea.vmem [#allocation5], %s411_s6 }
  0x43   : > { %649 = dma.done.wait (%p773_p8), %s197_s0, 128  }
  0x44   : > { %651 = vsyncadd (%p773_p8), %s197_s0, 4294967168  ;;  %v237_v0 = vld [vmem:[%s191_s12] sm:$0xff]  ;;  %v238_v1 = vld [vmem:[%s200_s19] sm:$0xff]  ;;  %s223_s25 = sand.u32 1, %s662_s10   ;;  %s415_s8 = sshll.u32 %s682_s15, 7 }
  0x45   : > { %v239_v2 = vmul.f32 0.5, %v237_v0  ;;  %v243_v3 = vmul.f32 0.5, %v238_v1  ;;  %s413_s24 = sshll.u32 %s223_s25, 3  ;;  %s299_s18 = scalar_lea.hbm %s904_s2, %s415_s8 }
  0x46   : > { %s225_s22 = scalar_lea.vmem [#allocation7], %s413_s24  ;;  %s288_s21 = scalar_lea.sflag [#allocation4], %s223_s25 }
  0x47   : > { %510 = vtanh.f32 %v239_v2  ;;  %s301_s27 = sshll.u32 %s225_s22, 4  ;;  %s694_s5 = smov [#allocation7]   ;;  %s302_s27 = int_to_ptr.vmem [resolvable:$true] %s301_s27 }
  0x48   : > { %512 = vtanh.f32 %v243_v3  ;;  %s582_s26 = scalar_lea.vmem %s302_s27, 128  ;;  %s586_s6 = sshll.u32 %s694_s5, 4  ;;  %s587_s6 = int_to_ptr.vmem [resolvable:$false] %s586_s6 }
  0x49   : > { %p583_p8 = scmp.ne.s32.totalorder %s302_s27, %s582_s26  ;;  %s588_s7 = scalar_lea.vmem %s587_s6, 256 }
  0x4a   : > { %p589_p4 = scmp.lt.s32.totalorder %s302_s27, %s587_s6  ;;  %p590_p11 = scmp.lt.s32.totalorder %s588_s7, %s582_s26 }
  0x4b   : > { %p584_p5 = pnand %p583_p8, %p791_p1 }
  0x4c   : > { %p591_p2 = por %p590_p11, %p589_p4 }
  0x4d   : > { %p585_p10 = pneg %p584_p5 }
  0x4f   : > { %p592_p12 = pnand %p591_p2, %p585_p10 }
  0x54   : > { %v511_v4 = vpop.eup %510 }
  0x55   : > { %v513_v5 = vpop.eup %512  ;;  %v241_v6 = vadd.f32 1.0, %v511_v4 }
  0x56   : > { %v245_v7 = vadd.f32 1.0, %v513_v5 }
  0x57   : > { %v242_v8 = vmul.f32 0.5, %v241_v6 }
  0x58   : > { %v246_v9 = vmul.f32 0.5, %v245_v7 }
  0x59   : > { %v249_v10 = vmax.f32 %v242_v8, 1e-07 }
  0x5a   : > { %v247_v11 = vadd.f32 %v246_v9, %v242_v8  ;;  %v251_v12 = vmax.f32 %v246_v9, 1e-07 }
  0x5b   : > { %v250_v13 = vmin.f32 %v249_v10, 0.9999999 }
  0x5c   : > { %v248_v14 = vmul.f32 0.5, %v247_v11  ;;  %v252_v15 = vmin.f32 %v251_v12, 0.9999999 }
  0x5d   : > { %v255_v16 = vsub.f32 1.0, %v250_v13  ;;  %514 = vlog2.f32 %v250_v13 }
  0x5e   : > { %v253_v17 = vmax.f32 %v248_v14, 1e-07  ;;  %v256_v18 = vsub.f32 1.0, %v252_v15  ;;  %516 = vlog2.f32 %v252_v15 }
  0x5f   : > { %518 = vlog2.f32 %v255_v16 }
  0x60   : > { %v254_v19 = vmin.f32 %v253_v17, 0.9999999  ;;  %520 = vlog2.f32 %v256_v18 }
  0x62   : > { %v257_v20 = vsub.f32 1.0, %v254_v19  ;;  %522 = vlog2.f32 %v254_v19 }
  0x64   : > { %524 = vlog2.f32 %v257_v20 }
  0x6a   : > { %v515_v21 = vpop.eup %514 }
  0x6b   : > { %v517_v22 = vpop.eup %516  ;;  %v263_v25 = vmul.f32 0.6931472, %v515_v21 }
  0x6c   : > { %v519_v23 = vpop.eup %518  ;;  %v272_v26 = vmul.f32 0.6931472, %v517_v22 }
  0x6d   : > { %v521_v24 = vpop.eup %520  ;;  %v267_v29 = vmul.f32 0.6931472, %v519_v23 }
  0x6e   : > { %v276_v30 = vmul.f32 0.6931472, %v521_v24 }
  0x6f   : > { %v523_v27 = vpop.eup %522 }
  0x70   : > { %v259_v28 = vmul.f32 0.6931472, %v523_v27 }
  0x71   : > { %v525_v31 = vpop.eup %524 }
  0x72   : > { %v261_v32 = vmul.f32 0.6931472, %v525_v31  ;;  %v264_v33 = vsub.f32 %v263_v25, %v259_v28  ;;  %v273_v34 = vsub.f32 %v272_v26, %v259_v28 }
  0x74   : > { %v265_v35 = vmul.f32 %v264_v33, %v250_v13  ;;  %v268_v36 = vsub.f32 %v267_v29, %v261_v32  ;;  %v274_v37 = vmul.f32 %v273_v34, %v252_v15  ;;  %v277_v38 = vsub.f32 %v276_v30, %v261_v32 }
  0x76   : > { %v269_v39 = vmul.f32 %v268_v36, %v255_v16  ;;  %v278_v40 = vmul.f32 %v277_v38, %v256_v18 }
  0x78   : > { %v270_v41 = vadd.f32 %v269_v39, %v265_v35  ;;  %v279_v42 = vadd.f32 %v278_v40, %v274_v37 }
  0x7a   : > { %v280_v43 = vadd.f32 %v279_v42, %v270_v41 }
  0x7c   : > { %v281_v44 = vmul.f32 0.5, %v280_v43 }
  0x7e   : > { %286 = vst [vmem:[%s225_s22] sm:$0xff] %v281_v44 }
  0x7f   : > { %595 = shalt.err (!%p592_p12)
}
  0x80   : > { %s596_s15 = scalar_lea.hbm %s299_s18, 128  ;;  %s600_s19 = scalar_lea.hbm %s904_s2, 256 }
  0x81   : > { %p597_p13 = scmp.ne.s32.totalorder %s299_s18, %s596_s15  ;;  %p601_p6 = scmp.lt.s32.totalorder %s299_s18, %s904_s2 }
  0x82   : > { %p602_p0 = scmp.lt.s32.totalorder %s600_s19, %s596_s15 }
  0x83   : > { %p598_p7 = pnand %p597_p13, %p791_p1 }
  0x84   : > { %p603_p8 = por %p602_p0, %p601_p6 }
  0x85   : > { %p599_p9 = pneg %p598_p7 }
  0x87   : > { %p604_p5 = pnand %p603_p8, %p599_p9 }
  0x89   : > { %607 = shalt.err (!%p604_p5)
}
  0x8a   : > { %422 = dma.vmem_to_hbm [thread:$0]  (%p791_p1), %s302_s27, 128, %s299_s18, %s288_s21  }
  0x8b PF: > { %s313_s8 = sand.u32 1, %s658_s9   ;;  %p913_p10 = scmp.ge.s32.totalorder %s690_s17, 2 }
  0x8c   : > { %s314_s22 = scalar_lea.sflag [#allocation4], %s313_s8 }
  0x8d   : > { %p432_p4 = pnand %p913_p10, %p796_p3 }
  0x8f   : > { %p433_p11 = pneg %p432_p4 }
  0x91   : > { %653 = dma.done.wait (%p433_p11), %s314_s22, 128  }
  0x92   : > { %655 = vsyncadd (%p433_p11), %s314_s22, 4294967168  ;;  %s21_s17 = sadd.s32 1, %s690_s17   ;;  %s914_s9 = smov %s662_s10 }
  0x93   : > { %p18_p2 = scmp.ge.s32.totalorder %s21_s17, 4   ;;  %s915_s10 = smov %s666_s11 }
  0x94   : > { %s916_s11 = smov %s782_s29  ;;  %s917_s12 = smov %s674_s13 }
  0x95   : > { %s918_s13 = smov %s678_s14  ;;  %s919_s14 = smov %s785_s30 }
  0x96   : > { %s920_s15 = smov %s686_s16  ;;  %s921_s16 = smov %s923_s20 }
  0x97   :  { %20 = sbr.rel (!%p18_p2) target bundleno = 12 (0xc), region = 90 }
  0x9c   :  { %319 = vsyncpa [#allocation3], 1 }
  0x9d   :  { %321 = vsyncpa [#allocation3 + $0x1], 1 }
  0x9e   :  { %322 = vsyncpa [#allocation6], 1 }
  0x9f   :  { %324 = vsyncpa [#allocation6 + $0x1], 1 }
  0xa0   :  { %325 = vsyncpa [#allocation4], 1 }
  0xa1   :  { %327 = vsyncpa [#allocation4 + $0x1], 1 }

</bundles_post_ra>
